<compile_context>
chip_gen: v5e
topology: v5e:2x2
jax: 0.10.0
libtpu: 0.0.40
codegen_flags: <defaults>
</compile_context>

<pallas_src>
import math

import jax
import jax.numpy as jnp
from jax import lax
from jax.experimental import pallas as pl
from jax.experimental.pallas import tpu as pltpu


# --------------------------------------------------------------------------------------
# Pallas kernel: grid = (batch, row-block).
# --------------------------------------------------------------------------------------
def _bifusion_kernel(x0_ref, x1_ref, x2_ref,
                     gup_ref, a1p_ref, b1p_ref, a2q_ref, b2q_ref,
                     fdw_ref, bd2_ref, mmix_ref, b3p_ref,
                     out_ref, carry_ref):
    f32, bf16 = jnp.float32, jnp.bfloat16
    r = pl.program_id(1)

    _, Hth, Wh, Co = x0_ref.shape          # x0 block: (1, Ht/2, Wh, Co)
    Ht = 2 * Hth                           # output rows in this block
    co2, co4 = 2 * Co, 4 * Co

    # Reset the top-halo carry at the first row block of every batch element.
    @pl.when(r == 0)
    def _():
        carry_ref[...] = jnp.zeros_like(carry_ref)

    # ---- x0 path: ConvTranspose(2x2, s=2) folded through conv3 (one matmul / parity) --
    x0 = x0_ref[0].reshape(Hth * Wh, Co)
    z_even = jnp.dot(x0, gup_ref[0], preferred_element_type=f32).reshape(Hth, Wh, co2)
    z_odd = jnp.dot(x0, gup_ref[1], preferred_element_type=f32).reshape(Hth, Wh, co2)

    # ---- x1 path: conv1 = 1x1 conv + BN + ReLU (column-pair packed lanes) -------------
    x1 = x1_ref[0].reshape(Ht * Wh, x1_ref.shape[-1])
    y1 = jnp.maximum(
        jnp.dot(x1, a1p_ref[...], preferred_element_type=f32) + b1p_ref[...], 0.0)

    # ---- x2 path: conv2 = 1x1 + BN + ReLU, then 3x3 stride-2 downsample ---------------
    x2 = x2_ref[0].reshape(2 * Ht * Wh, x2_ref.shape[-1])
    t2 = jnp.maximum(
        jnp.dot(x2, a2q_ref[...], preferred_element_type=f32) + b2q_ref[...], 0.0)
    t2 = t2.astype(bf16).reshape(2, Ht * Wh, co4)
    r_even = t2[0]                         # input rows 2i   (contiguous leading slice)
    r_odd = t2[1]                          # input rows 2i+1 (contiguous leading slice)

    # Fused (main | left) tap matmuls: result lanes [0:2Co] stay in the same column
    # block, lanes [2Co:4Co] belong to the NEXT column block (rolled below).
    p_same = (jnp.dot(r_even, fdw_ref[1], preferred_element_type=f32)
              + jnp.dot(r_odd, fdw_ref[2], preferred_element_type=f32)
              ).reshape(Ht, Wh, co4)
    p_next = jnp.dot(r_odd, fdw_ref[0], preferred_element_type=f32).reshape(Ht, Wh, co4)

    # Shift the dy=0 RESULT down one output row (instead of building a shifted copy of
    # the 2x wider input); row 0 takes the halo contribution carried from the previous
    # row block (zeros for the first block: padding row).
    halo = carry_ref[...]                  # (Wh, 4Co)
    carry_ref[...] = p_next[Ht - 1]        # halo for the next row block
    total = p_same + jnp.concatenate([halo[None], p_next[:Ht - 1]], axis=0)

    main = total[..., :co2]
    left = pltpu.roll(total[..., co2:], shift=1, axis=1)          # move to next col block
    col0 = lax.broadcasted_iota(jnp.int32, (1, Wh, 1), 1) == 0    # global first col block
    left = jnp.where(col0, 0.0, left)
    y2 = jnp.maximum(main + left + bd2_ref[...], 0.0).reshape(Ht * Wh, co2)

    # ---- conv3: 1x1 over concat(up, conv1, down) == folded matmuls --------------------
    mix = (jnp.dot(y1.astype(bf16), mmix_ref[0], preferred_element_type=f32)
           + jnp.dot(y2.astype(bf16), mmix_ref[1], preferred_element_type=f32))
    mix = mix.reshape(Hth, 2, Wh, co2)     # (x0-row, row parity, col block, lanes) - free
    b3 = b3p_ref[...]

    # Per-parity output writes: no interleave stack, wrapper reshape back to NHWC is free.
    out_ref[0, :, 0] = jnp.maximum(z_even + mix[:, 0] + b3, 0.0).astype(out_ref.dtype)
    out_ref[0, :, 1] = jnp.maximum(z_odd + mix[:, 1] + b3, 0.0).astype(out_ref.dtype)


# --------------------------------------------------------------------------------------
# Wrapper: free column re-packing, row-deinterleave of x2, bf16 cast, pallas_call.
# --------------------------------------------------------------------------------------
def _pick_row_block(H, target=8):
    """Largest even divisor of H that is <= target (at least 2)."""
    best, t = 2, 2
    while t <= min(H, target):
        if H % t == 0:
            best = t
        t += 2
    return best


@jax.jit
def bifusion_forward(x0, x1, x2, params):
    """BiFusion forward.  x0/x1/x2 are NHWC (high / current / low level features)."""
    gup, a1p, b1p, a2q, b2q, fdw, bd2, mmix, b3p = params
    B, Hh, Wh0, Co = x0.shape
    _, H, W, C0 = x1.shape
    _, H2, W2, C1 = x2.shape
    assert H % 2 == 0 and W % 2 == 0, "current-level H and W must be even"
    assert (H, W) == (2 * Hh, 2 * Wh0), "x1 must be 2x the spatial size of x0"
    assert (H2, W2) == (2 * H, 2 * W), "x2 must be 2x the spatial size of x1"
    Wh = W // 2

    Ht = _pick_row_block(H)                # even row block; halo carried via scratch row
    Hth = Ht // 2
    nR = H // Ht

    # Free (layout-preserving) column packing + bf16 cast for MXU operands / half DMA.
    bf16 = jnp.bfloat16
    x0b = x0.astype(bf16)
    x1b = x1.reshape(B, H, Wh, 2 * C0).astype(bf16)
    # Row-deinterleave x2 so the downsample's row-parity planes are contiguous leading
    # slices inside the kernel (one wrapper-side transpose, fused by XLA).
    x2b = jnp.transpose(x2.reshape(B, H, 2, Wh, 4 * C1).astype(bf16), (0, 2, 1, 3, 4))

    # Shape-aware VMEM budget (double-buffered blocks + weights + temporaries), clamped
    # so it stays valid on v7x's 64 MiB VMEM as well as 128 MiB parts.
    weights = (gup, a1p, b1p, a2q, b2q, fdw, bd2, mmix, b3p)
    block_bytes = (2 * math.prod((Hth, Wh, Co)) * 2
                   + 2 * math.prod((Ht, Wh, 2 * C0)) * 2
                   + 2 * math.prod((2, Ht, Wh, 4 * C1)) * 2
                   + 2 * math.prod((Hth, 2, Wh, 2 * Co)) * 4
                   + 2 * sum(w.size * w.dtype.itemsize for w in weights))
    temp_bytes = 10 * math.prod((Ht, Wh, 4 * Co)) * 4
    vmem_limit = int(min(max(2 * (block_bytes + temp_bytes), 16 << 20), 64 << 20))

    out_p = pl.pallas_call(
        _bifusion_kernel,
        out_shape=jax.ShapeDtypeStruct((B, Hh, 2, Wh, 2 * Co), jnp.float32),
        grid_spec=pltpu.PrefetchScalarGridSpec(
            num_scalar_prefetch=0,
            grid=(B, nR),
            in_specs=[
                pl.BlockSpec((1, Hth, Wh, Co), lambda b, r: (b, r, 0, 0)),
                pl.BlockSpec((1, Ht, Wh, 2 * C0), lambda b, r: (b, r, 0, 0)),
                pl.BlockSpec((1, 2, Ht, Wh, 4 * C1), lambda b, r: (b, 0, r, 0, 0)),
                pl.BlockSpec(gup.shape, lambda b, r: (0, 0, 0)),
                pl.BlockSpec(a1p.shape, lambda b, r: (0, 0)),
                pl.BlockSpec(b1p.shape, lambda b, r: (0, 0)),
                pl.BlockSpec(a2q.shape, lambda b, r: (0, 0)),
                pl.BlockSpec(b2q.shape, lambda b, r: (0, 0)),
                pl.BlockSpec(fdw.shape, lambda b, r: (0, 0, 0)),
                pl.BlockSpec(bd2.shape, lambda b, r: (0, 0)),
                pl.BlockSpec(mmix.shape, lambda b, r: (0, 0, 0)),
                pl.BlockSpec(b3p.shape, lambda b, r: (0, 0)),
            ],
            out_specs=pl.BlockSpec((1, Hth, 2, Wh, 2 * Co),
                                   lambda b, r: (b, r, 0, 0, 0)),
            scratch_shapes=[pltpu.VMEM((Wh, 4 * Co), jnp.float32)],
        ),
        compiler_params=pltpu.CompilerParams(
            dimension_semantics=("parallel", "arbitrary"),
            vmem_limit_bytes=vmem_limit),
    )(x0b, x1b, x2b, gup, a1p, b1p, a2q, b2q, fdw, bd2, mmix, b3p)

    # Free unpack of the (row-parity, column-pair) packing.
    return out_p.reshape(B, H, W, Co)


# --------------------------------------------------------------------------------------
# Parameter construction (deterministic), BN folding, and host-side weight packing.
# --------------------------------------------------------------------------------------
def make_params(c0, c1, co, key):
    """Random deterministic BiFusion parameters with BatchNorm (eps=1e-3) folded."""
    ks = jax.random.split(key, 10)
    eps = 1e-3

    def w(k, shape, scale=0.1):
        return scale * jax.random.normal(k, shape, jnp.float32)

    def bn(k, n):
        k0, k1, k2, k3 = jax.random.split(k, 4)
        gamma = 1.0 + 0.1 * jax.random.normal(k0, (n,), jnp.float32)
        beta = 0.05 * jax.random.normal(k1, (n,), jnp.float32)
        mean = 0.05 * jax.random.normal(k2, (n,), jnp.float32)
        var = 1.0 + 0.1 * jnp.abs(jax.random.normal(k3, (n,), jnp.float32))
        return gamma, beta, mean, var

    def fold_1x1(w_oi, bnp):
        gamma, beta, mean, var = bnp
        s = gamma / jnp.sqrt(var + eps)
        return (w_oi * s[:, None]).T, beta - mean * s      # (Cin, Cout), (Cout,)

    A1, b1 = fold_1x1(w(ks[0], (co, c0)), bn(ks[1], co))            # conv1
    A2, b2 = fold_1x1(w(ks[2], (co, c1)), bn(ks[3], co))            # conv2
    A3, b3 = fold_1x1(w(ks[4], (co, 3 * co)), bn(ks[5], co))        # conv3

    wd = w(ks[6], (co, co, 3, 3))                                   # downsample (OIHW)
    gamma, beta, mean, var = bn(ks[7], co)
    s = gamma / jnp.sqrt(var + eps)
    D = jnp.transpose(wd * s[:, None, None, None], (2, 3, 1, 0))    # HWIO (3,3,Cin,Cout)
    bd = beta - mean * s

    Wt = w(ks[8], (co, co, 2, 2))                                   # ConvTranspose (in,out,kh,kw)
    bt = w(ks[9], (co,))

    return dict(A1=A1, b1=b1, A2=A2, b2=b2, A3=A3, b3=b3, D=D, bd=bd, Wt=Wt, bt=bt)


def pack_kernel_params(raw, co):
    """Fuse / re-layout folded weights for the column-packed, bf16-operand kernel."""
    A1, b1 = raw["A1"], raw["b1"]
    A2, b2 = raw["A2"], raw["b2"]
    A3, b3 = raw["A3"], raw["b3"]
    Wt, bt = raw["Wt"], raw["bt"]
    D, bd = raw["D"], raw["bd"]
    f32, bf16 = jnp.float32, jnp.bfloat16

    A3_0, A3_1, A3_2 = A3[:co], A3[co:2 * co], A3[2 * co:]

    # ConvTranspose taps composed with conv3's first channel block (one per row parity).
    def tap(ki, kj):
        return Wt[:, :, ki, kj] @ A3_0                               # (Co, Co)
    gup = jnp.stack([jnp.concatenate([tap(0, 0), tap(0, 1)], axis=1),
                     jnp.concatenate([tap(1, 0), tap(1, 1)], axis=1)], axis=0)

    eye2 = jnp.eye(2, dtype=f32)
    eye4 = jnp.eye(4, dtype=f32)
    a1p = jnp.kron(eye2, A1)                                         # (2*C0, 2*Co)
    b1p = jnp.tile(b1, 2).reshape(1, -1)
    a2q = jnp.kron(eye4, A2)                                         # (4*C1, 4*Co)
    b2q = jnp.tile(b2, 4).reshape(1, -1)

    # Fused downsample tap matrices for the column-quad packed conv2 output:
    #   output lanes [0:2Co]  -> same column block ("main"),
    #   output lanes [2Co:4Co]-> next column block ("left", rolled in-kernel).
    Z = jnp.zeros((co, co), f32)
    fdw = []
    for dy in range(3):
        emain = jnp.concatenate([
            jnp.concatenate([D[dy, 1], Z], axis=1),                  # input col 4j
            jnp.concatenate([D[dy, 2], D[dy, 0]], axis=1),           # input col 4j+1
            jnp.concatenate([Z, D[dy, 1]], axis=1),                  # input col 4j+2
            jnp.concatenate([Z, D[dy, 2]], axis=1)], axis=0)         # input col 4j+3
        eleft = jnp.concatenate([
            jnp.zeros((3 * co, 2 * co), f32),
            jnp.concatenate([D[dy, 0], Z], axis=1)], axis=0)         # input col 4(j-1)+3
        fdw.append(jnp.concatenate([emain, eleft], axis=1))
    fdw = jnp.stack(fdw, axis=0)                                     # (3, 4*Co, 4*Co)
    bd2 = jnp.tile(bd, 2).reshape(1, -1)

    # conv3 mixing of the conv1 / downsample branches (upsample branch already in gup).
    mmix = jnp.stack([jnp.kron(eye2, A3_1), jnp.kron(eye2, A3_2)], axis=0)
    b3p = jnp.tile(b3 + bt @ A3_0, 2).reshape(1, -1)

    return (gup.astype(bf16), a1p.astype(bf16), b1p.astype(f32),
            a2q.astype(bf16), b2q.astype(f32), fdw.astype(bf16),
            bd2.astype(f32), mmix.astype(bf16), b3p.astype(f32))


# --------------------------------------------------------------------------------------
# Pure-JAX reference (NHWC, f32, HIGHEST precision) for validation.
# --------------------------------------------------------------------------------------
def ref_forward(x0, x1, x2, raw):
    A1, b1 = raw["A1"], raw["b1"]
    A2, b2 = raw["A2"], raw["b2"]
    A3, b3 = raw["A3"], raw["b3"]
    Wt, bt = raw["Wt"], raw["bt"]
    D, bd = raw["D"], raw["bd"]
    hi = lax.Precision.HIGHEST

    B, Hh, Wh, Co = x0.shape
    H, W = 2 * Hh, 2 * Wh

    # upsample: ConvTranspose2d(k=2, s=2, bias=True)
    y0 = jnp.zeros((B, H, W, Co), jnp.float32)
    for ki in range(2):
        for kj in range(2):
            t = jnp.einsum('bhwc,co->bhwo', x0, Wt[:, :, ki, kj], precision=hi)
            y0 = y0.at[:, ki::2, kj::2, :].set(t)
    y0 = y0 + bt

    y1 = jax.nn.relu(jnp.einsum('bhwc,co->bhwo', x1, A1, precision=hi) + b1)

    t2 = jax.nn.relu(jnp.einsum('bhwc,co->bhwo', x2, A2, precision=hi) + b2)
    y2 = lax.conv_general_dilated(
        t2, D, window_strides=(2, 2), padding=[(1, 1), (1, 1)],
        dimension_numbers=('NHWC', 'HWIO', 'NHWC'), precision=hi)
    y2 = jax.nn.relu(y2 + bd)

    cat = jnp.concatenate([y0, y1, y2], axis=-1)
    return jax.nn.relu(jnp.einsum('bhwc,co->bhwo', cat, A3, precision=hi) + b3)


if __name__ == "__main__":
    B = 2
    C0, C1, Co = 4, 8, 4        # in_channels0, in_channels1, out_channels
    H, W = 16, 16               # current-level (and output) spatial size

    key = jax.random.PRNGKey(0)
    kx0, kx1, kx2, kp = jax.random.split(key, 4)
    x0 = jax.random.normal(kx0, (B, H // 2, W // 2, Co), jnp.float32)   # high level
    x1 = jax.random.normal(kx1, (B, H, W, C0), jnp.float32)             # current level
    x2 = jax.random.normal(kx2, (B, 2 * H, 2 * W, C1), jnp.float32)     # low level

    raw = make_params(C0, C1, Co, kp)
    params = pack_kernel_params(raw, Co)

    out = bifusion_forward(x0, x1, x2, params)
    out = jax.block_until_ready(out)

    ref = ref_forward(x0, x1, x2, raw)
    assert out.shape == (B, H, W, Co)
    err = float(jnp.max(jnp.abs(out - ref)))
    # bf16 MXU operands (f32 accumulation) vs. an f32 HIGHEST-precision reference.
    assert err < 3e-2, f"mismatch vs pure-JAX reference: max |diff| = {err}"

    print("KERNEL_OK")
</pallas_src>

<mosaic_0001>
module attributes {stable_mosaic.version = 11 : i64} {
  func.func @_bifusion_kernel(%arg0: i32, %arg1: i32, %arg2: memref<1x4x8x4xbf16, #tpu.memory_space<vmem>>, %arg3: memref<1x8x8x8xbf16, #tpu.memory_space<vmem>>, %arg4: memref<1x2x8x8x32xbf16, #tpu.memory_space<vmem>>, %arg5: memref<2x4x8xbf16, #tpu.memory_space<vmem>>, %arg6: memref<8x8xbf16, #tpu.memory_space<vmem>>, %arg7: memref<1x8xf32, #tpu.memory_space<vmem>>, %arg8: memref<32x16xbf16, #tpu.memory_space<vmem>>, %arg9: memref<1x16xf32, #tpu.memory_space<vmem>>, %arg10: memref<3x16x16xbf16, #tpu.memory_space<vmem>>, %arg11: memref<1x8xf32, #tpu.memory_space<vmem>>, %arg12: memref<2x8x8xbf16, #tpu.memory_space<vmem>>, %arg13: memref<1x8xf32, #tpu.memory_space<vmem>>, %arg14: memref<1x4x2x8x8xf32, #tpu.memory_space<vmem>>, %arg15: memref<8x16xf32, #tpu.memory_space<vmem>>) attributes {dimension_semantics = [#tpu.dimension_semantics<parallel>, #tpu.dimension_semantics<arbitrary>], iteration_bounds = array<i64: 2, 2>, scalar_prefetch = 0 : i64, scratch_operands = 1 : i64, tpu.core_type = #tpu.core_type<tc>, window_params = [{transform_indices = @transform_0, window_bounds = array<i64: 1, 4, 8, 4>}, {transform_indices = @transform_1, window_bounds = array<i64: 1, 8, 8, 8>}, {transform_indices = @transform_2, window_bounds = array<i64: 1, 2, 8, 8, 32>}, {pipeline_mode = #tpu.pipeline_mode<synchronous>, transform_indices = @transform_3, window_bounds = array<i64: 2, 4, 8>}, {pipeline_mode = #tpu.pipeline_mode<synchronous>, transform_indices = @transform_4, window_bounds = array<i64: 8, 8>}, {pipeline_mode = #tpu.pipeline_mode<synchronous>, transform_indices = @transform_5, window_bounds = array<i64: 1, 8>}, {pipeline_mode = #tpu.pipeline_mode<synchronous>, transform_indices = @transform_6, window_bounds = array<i64: 32, 16>}, {pipeline_mode = #tpu.pipeline_mode<synchronous>, transform_indices = @transform_7, window_bounds = array<i64: 1, 16>}, {pipeline_mode = #tpu.pipeline_mode<synchronous>, transform_indices = @transform_8, window_bounds = array<i64: 3, 16, 16>}, {pipeline_mode = #tpu.pipeline_mode<synchronous>, transform_indices = @transform_9, window_bounds = array<i64: 1, 8>}, {pipeline_mode = #tpu.pipeline_mode<synchronous>, transform_indices = @transform_10, window_bounds = array<i64: 2, 8, 8>}, {pipeline_mode = #tpu.pipeline_mode<synchronous>, transform_indices = @transform_11, window_bounds = array<i64: 1, 8>}, {transform_indices = @transform_12, window_bounds = array<i64: 1, 4, 2, 8, 8>}]} {
    %c0_i32 = arith.constant 0 : i32
    %0 = arith.cmpi eq, %arg1, %c0_i32 : i32
    %1 = arith.extui %0 : i1 to i32
    %c0_i32_0 = arith.constant 0 : i32
    %2 = arith.cmpi ne, %1, %c0_i32_0 : i32
    scf.if %2 {
      %cst_73 = arith.constant 0.000000e+00 : f32
      %111 = vector.broadcast %cst_73 : f32 to vector<8x16xf32>
      %c0_74 = arith.constant 0 : index
      %c0_75 = arith.constant 0 : index
      %112 = vector.load %arg15[%c0_74, %c0_75] : memref<8x16xf32, #tpu.memory_space<vmem>>, vector<8x16xf32>
      tpu.vector_store %arg15[%c0_74, %c0_75], %111 {strides = array<i32>} : memref<8x16xf32, #tpu.memory_space<vmem>>, vector<8x16xf32>,
    } else {
    }
    %c0 = arith.constant 0 : index
    %c0_1 = arith.constant 0 : index
    %c0_2 = arith.constant 0 : index
    %c0_3 = arith.constant 0 : index
    %3 = vector.load %arg2[%c0, %c0_1, %c0_2, %c0_3] : memref<1x4x8x4xbf16, #tpu.memory_space<vmem>>, vector<1x4x8x4xbf16>
    %4 = vector.shape_cast %3 : vector<1x4x8x4xbf16> to vector<4x8x4xbf16>
    %5 = vector.shape_cast %4 : vector<4x8x4xbf16> to vector<32x4xbf16>
    %c0_4 = arith.constant 0 : index
    %c0_5 = arith.constant 0 : index
    %c0_6 = arith.constant 0 : index
    %6 = vector.load %arg5[%c0_4, %c0_5, %c0_6] : memref<2x4x8xbf16, #tpu.memory_space<vmem>>, vector<1x4x8xbf16>
    %7 = vector.shape_cast %6 : vector<1x4x8xbf16> to vector<4x8xbf16>
    %cst = arith.constant dense<0.000000e+00> : vector<32x8xf32>
    %8 = tpu.matmul %5, %7, %cst {dimension_numbers = #tpu.dot_dimension_numbers<[1], [0], [0], [1], [0, 0, 1, 1], [], []>} : vector<32x4xbf16>, vector<4x8xbf16>, vector<32x8xf32> -> vector<32x8xf32>
    %9 = vector.shape_cast %8 : vector<32x8xf32> to vector<4x8x8xf32>
    %c1 = arith.constant 1 : index
    %c0_7 = arith.constant 0 : index
    %c0_8 = arith.constant 0 : index
    %10 = vector.load %arg5[%c1, %c0_7, %c0_8] : memref<2x4x8xbf16, #tpu.memory_space<vmem>>, vector<1x4x8xbf16>
    %11 = vector.shape_cast %10 : vector<1x4x8xbf16> to vector<4x8xbf16>
    %cst_9 = arith.constant dense<0.000000e+00> : vector<32x8xf32>
    %12 = tpu.matmul %5, %11, %cst_9 {dimension_numbers = #tpu.dot_dimension_numbers<[1], [0], [0], [1], [0, 0, 1, 1], [], []>} : vector<32x4xbf16>, vector<4x8xbf16>, vector<32x8xf32> -> vector<32x8xf32>
    %13 = vector.shape_cast %12 : vector<32x8xf32> to vector<4x8x8xf32>
    %c0_10 = arith.constant 0 : index
    %c0_11 = arith.constant 0 : index
    %c0_12 = arith.constant 0 : index
    %c0_13 = arith.constant 0 : index
    %14 = vector.load %arg3[%c0_10, %c0_11, %c0_12, %c0_13] : memref<1x8x8x8xbf16, #tpu.memory_space<vmem>>, vector<1x8x8x8xbf16>
    %15 = vector.shape_cast %14 : vector<1x8x8x8xbf16> to vector<8x8x8xbf16>
    %16 = vector.shape_cast %15 : vector<8x8x8xbf16> to vector<64x8xbf16>
    %c0_14 = arith.constant 0 : index
    %c0_15 = arith.constant 0 : index
    %17 = vector.load %arg6[%c0_14, %c0_15] : memref<8x8xbf16, #tpu.memory_space<vmem>>, vector<8x8xbf16>
    %cst_16 = arith.constant dense<0.000000e+00> : vector<64x8xf32>
    %18 = tpu.matmul %16, %17, %cst_16 {dimension_numbers = #tpu.dot_dimension_numbers<[1], [0], [0], [1], [0, 0, 1, 1], [], []>} : vector<64x8xbf16>, vector<8x8xbf16>, vector<64x8xf32> -> vector<64x8xf32>
    %c0_17 = arith.constant 0 : index
    %c0_18 = arith.constant 0 : index
    %19 = vector.load %arg7[%c0_17, %c0_18] : memref<1x8xf32, #tpu.memory_space<vmem>>, vector<1x8xf32>
    %20 = vector.broadcast %19 : vector<1x8xf32> to vector<64x8xf32>
    %21 = arith.addf %18, %20 : vector<64x8xf32>
    %cst_19 = arith.constant 0.000000e+00 : f32
    %22 = vector.broadcast %cst_19 : f32 to vector<64x8xf32>
    %23 = arith.maximumf %21, %22 : vector<64x8xf32>
    %c0_20 = arith.constant 0 : index
    %c0_21 = arith.constant 0 : index
    %c0_22 = arith.constant 0 : index
    %c0_23 = arith.constant 0 : index
    %c0_24 = arith.constant 0 : index
    %24 = vector.load %arg4[%c0_20, %c0_21, %c0_22, %c0_23, %c0_24] : memref<1x2x8x8x32xbf16, #tpu.memory_space<vmem>>, vector<1x2x8x8x32xbf16>
    %25 = vector.shape_cast %24 : vector<1x2x8x8x32xbf16> to vector<2x8x8x32xbf16>
    %26 = vector.shape_cast %25 : vector<2x8x8x32xbf16> to vector<128x32xbf16>
    %c0_25 = arith.constant 0 : index
    %c0_26 = arith.constant 0 : index
    %27 = vector.load %arg8[%c0_25, %c0_26] : memref<32x16xbf16, #tpu.memory_space<vmem>>, vector<32x16xbf16>
    %cst_27 = arith.constant dense<0.000000e+00> : vector<128x16xf32>
    %28 = tpu.matmul %26, %27, %cst_27 {dimension_numbers = #tpu.dot_dimension_numbers<[1], [0], [0], [1], [0, 0, 1, 1], [], []>} : vector<128x32xbf16>, vector<32x16xbf16>, vector<128x16xf32> -> vector<128x16xf32>
    %c0_28 = arith.constant 0 : index
    %c0_29 = arith.constant 0 : index
    %29 = vector.load %arg9[%c0_28, %c0_29] : memref<1x16xf32, #tpu.memory_space<vmem>>, vector<1x16xf32>
    %30 = vector.broadcast %29 : vector<1x16xf32> to vector<128x16xf32>
    %31 = arith.addf %28, %30 : vector<128x16xf32>
    %cst_30 = arith.constant 0.000000e+00 : f32
    %32 = vector.broadcast %cst_30 : f32 to vector<128x16xf32>
    %33 = arith.maximumf %31, %32 : vector<128x16xf32>
    %34 = arith.truncf %33 : vector<128x16xf32> to vector<128x16xbf16>
    %35 = vector.shape_cast %34 : vector<128x16xbf16> to vector<2x64x16xbf16>
    %36 = vector.extract_strided_slice %35 {offsets = [0, 0, 0], sizes = [1, 64, 16], strides = [1, 1, 1]} : vector<2x64x16xbf16> to vector<1x64x16xbf16>
    %37 = vector.shape_cast %36 : vector<1x64x16xbf16> to vector<64x16xbf16>
    %38 = vector.extract_strided_slice %35 {offsets = [1, 0, 0], sizes = [1, 64, 16], strides = [1, 1, 1]} : vector<2x64x16xbf16> to vector<1x64x16xbf16>
    %39 = vector.shape_cast %38 : vector<1x64x16xbf16> to vector<64x16xbf16>
    %c1_31 = arith.constant 1 : index
    %c0_32 = arith.constant 0 : index
    %c0_33 = arith.constant 0 : index
    %40 = vector.load %arg10[%c1_31, %c0_32, %c0_33] : memref<3x16x16xbf16, #tpu.memory_space<vmem>>, vector<1x16x16xbf16>
    %41 = vector.shape_cast %40 : vector<1x16x16xbf16> to vector<16x16xbf16>
    %cst_34 = arith.constant dense<0.000000e+00> : vector<64x16xf32>
    %42 = tpu.matmul %37, %41, %cst_34 {dimension_numbers = #tpu.dot_dimension_numbers<[1], [0], [0], [1], [0, 0, 1, 1], [], []>} : vector<64x16xbf16>, vector<16x16xbf16>, vector<64x16xf32> -> vector<64x16xf32>
    %c2 = arith.constant 2 : index
    %c0_35 = arith.constant 0 : index
    %c0_36 = arith.constant 0 : index
    %43 = vector.load %arg10[%c2, %c0_35, %c0_36] : memref<3x16x16xbf16, #tpu.memory_space<vmem>>, vector<1x16x16xbf16>
    %44 = vector.shape_cast %43 : vector<1x16x16xbf16> to vector<16x16xbf16>
    %cst_37 = arith.constant dense<0.000000e+00> : vector<64x16xf32>
    %45 = tpu.matmul %39, %44, %cst_37 {dimension_numbers = #tpu.dot_dimension_numbers<[1], [0], [0], [1], [0, 0, 1, 1], [], []>} : vector<64x16xbf16>, vector<16x16xbf16>, vector<64x16xf32> -> vector<64x16xf32>
    %46 = arith.addf %42, %45 : vector<64x16xf32>
    %47 = vector.shape_cast %46 : vector<64x16xf32> to vector<8x8x16xf32>
    %c0_38 = arith.constant 0 : index
    %c0_39 = arith.constant 0 : index
    %c0_40 = arith.constant 0 : index
    %48 = vector.load %arg10[%c0_38, %c0_39, %c0_40] : memref<3x16x16xbf16, #tpu.memory_space<vmem>>, vector<1x16x16xbf16>
    %49 = vector.shape_cast %48 : vector<1x16x16xbf16> to vector<16x16xbf16>
    %cst_41 = arith.constant dense<0.000000e+00> : vector<64x16xf32>
    %50 = tpu.matmul %39, %49, %cst_41 {dimension_numbers = #tpu.dot_dimension_numbers<[1], [0], [0], [1], [0, 0, 1, 1], [], []>} : vector<64x16xbf16>, vector<16x16xbf16>, vector<64x16xf32> -> vector<64x16xf32>
    %51 = vector.shape_cast %50 : vector<64x16xf32> to vector<8x8x16xf32>
    %c0_42 = arith.constant 0 : index
    %c0_43 = arith.constant 0 : index
    %52 = vector.load %arg15[%c0_42, %c0_43] : memref<8x16xf32, #tpu.memory_space<vmem>>, vector<8x16xf32>
    %53 = vector.extract_strided_slice %51 {offsets = [7, 0, 0], sizes = [1, 8, 16], strides = [1, 1, 1]} : vector<8x8x16xf32> to vector<1x8x16xf32>
    %54 = vector.shape_cast %53 : vector<1x8x16xf32> to vector<8x16xf32>
    %c0_44 = arith.constant 0 : index
    %c0_45 = arith.constant 0 : index
    %55 = vector.load %arg15[%c0_44, %c0_45] : memref<8x16xf32, #tpu.memory_space<vmem>>, vector<8x16xf32>
    tpu.vector_store %arg15[%c0_44, %c0_45], %54 {strides = array<i32>} : memref<8x16xf32, #tpu.memory_space<vmem>>, vector<8x16xf32>,
    %56 = vector.shape_cast %52 : vector<8x16xf32> to vector<1x8x16xf32>
    %57 = vector.extract_strided_slice %51 {offsets = [0, 0, 0], sizes = [7, 8, 16], strides = [1, 1, 1]} : vector<8x8x16xf32> to vector<7x8x16xf32>
    %58 = tpu.concatenate %56, %57 in 0 : vector<1x8x16xf32>, vector<7x8x16xf32> -> vector<8x8x16xf32>
    %59 = arith.addf %47, %58 : vector<8x8x16xf32>
    %60 = vector.extract_strided_slice %59 {offsets = [0, 0, 0], sizes = [8, 8, 8], strides = [1, 1, 1]} : vector<8x8x16xf32> to vector<8x8x8xf32>
    %61 = vector.extract_strided_slice %59 {offsets = [0, 0, 8], sizes = [8, 8, 8], strides = [1, 1, 1]} : vector<8x8x16xf32> to vector<8x8x8xf32>
    %c1_i32 = arith.constant 1 : i32
    %62 = tpu.dynamic_rotate %61 by %c1_i32 dim 1 : vector<8x8x8xf32>, i32 -> vector<8x8x8xf32>
    %63 = tpu.iota {dimensions = array<i32: 1>} : vector<1x8x1xi32>
    %c0_i32_46 = arith.constant 0 : i32
    %64 = vector.broadcast %c0_i32_46 : i32 to vector<1x8x1xi32>
    %65 = arith.cmpi eq, %63, %64 : vector<1x8x1xi32>
    %cst_47 = arith.constant 0.000000e+00 : f32
    %66 = vector.shape_cast %65 : vector<1x8x1xi1> to vector<1x8x1xi1>
    %67 = vector.broadcast %66 : vector<1x8x1xi1> to vector<8x8x8xi1>
    %68 = vector.broadcast %cst_47 : f32 to vector<8x8x8xf32>
    %69 = arith.select %67, %68, %62 : vector<8x8x8xi1>, vector<8x8x8xf32>
    %70 = arith.addf %60, %69 : vector<8x8x8xf32>
    %c0_48 = arith.constant 0 : index
    %c0_49 = arith.constant 0 : index
    %71 = vector.load %arg11[%c0_48, %c0_49] : memref<1x8xf32, #tpu.memory_space<vmem>>, vector<1x8xf32>
    %72 = vector.shape_cast %71 : vector<1x8xf32> to vector<1x1x8xf32>
    %73 = vector.broadcast %72 : vector<1x1x8xf32> to vector<8x8x8xf32>
    %74 = arith.addf %70, %73 : vector<8x8x8xf32>
    %cst_50 = arith.constant 0.000000e+00 : f32
    %75 = vector.broadcast %cst_50 : f32 to vector<8x8x8xf32>
    %76 = arith.maximumf %74, %75 : vector<8x8x8xf32>
    %77 = vector.shape_cast %76 : vector<8x8x8xf32> to vector<64x8xf32>
    %78 = arith.truncf %23 : vector<64x8xf32> to vector<64x8xbf16>
    %c0_51 = arith.constant 0 : index
    %c0_52 = arith.constant 0 : index
    %c0_53 = arith.constant 0 : index
    %79 = vector.load %arg12[%c0_51, %c0_52, %c0_53] : memref<2x8x8xbf16, #tpu.memory_space<vmem>>, vector<1x8x8xbf16>
    %80 = vector.shape_cast %79 : vector<1x8x8xbf16> to vector<8x8xbf16>
    %cst_54 = arith.constant dense<0.000000e+00> : vector<64x8xf32>
    %81 = tpu.matmul %78, %80, %cst_54 {dimension_numbers = #tpu.dot_dimension_numbers<[1], [0], [0], [1], [0, 0, 1, 1], [], []>} : vector<64x8xbf16>, vector<8x8xbf16>, vector<64x8xf32> -> vector<64x8xf32>
    %82 = arith.truncf %77 : vector<64x8xf32> to vector<64x8xbf16>
    %c1_55 = arith.constant 1 : index
    %c0_56 = arith.constant 0 : index
    %c0_57 = arith.constant 0 : index
    %83 = vector.load %arg12[%c1_55, %c0_56, %c0_57] : memref<2x8x8xbf16, #tpu.memory_space<vmem>>, vector<1x8x8xbf16>
    %84 = vector.shape_cast %83 : vector<1x8x8xbf16> to vector<8x8xbf16>
    %cst_58 = arith.constant dense<0.000000e+00> : vector<64x8xf32>
    %85 = tpu.matmul %82, %84, %cst_58 {dimension_numbers = #tpu.dot_dimension_numbers<[1], [0], [0], [1], [0, 0, 1, 1], [], []>} : vector<64x8xbf16>, vector<8x8xbf16>, vector<64x8xf32> -> vector<64x8xf32>
    %86 = arith.addf %81, %85 : vector<64x8xf32>
    %87 = vector.shape_cast %86 : vector<64x8xf32> to vector<4x2x8x8xf32>
    %c0_59 = arith.constant 0 : index
    %c0_60 = arith.constant 0 : index
    %88 = vector.load %arg13[%c0_59, %c0_60] : memref<1x8xf32, #tpu.memory_space<vmem>>, vector<1x8xf32>
    %89 = vector.extract_strided_slice %87 {offsets = [0, 0, 0, 0], sizes = [4, 1, 8, 8], strides = [1, 1, 1, 1]} : vector<4x2x8x8xf32> to vector<4x1x8x8xf32>
    %90 = vector.shape_cast %89 : vector<4x1x8x8xf32> to vector<4x8x8xf32>
    %91 = arith.addf %9, %90 : vector<4x8x8xf32>
    %92 = vector.shape_cast %88 : vector<1x8xf32> to vector<1x1x8xf32>
    %93 = vector.broadcast %92 : vector<1x1x8xf32> to vector<4x8x8xf32>
    %94 = arith.addf %91, %93 : vector<4x8x8xf32>
    %cst_61 = arith.constant 0.000000e+00 : f32
    %95 = vector.broadcast %cst_61 : f32 to vector<4x8x8xf32>
    %96 = arith.maximumf %94, %95 : vector<4x8x8xf32>
    %c0_62 = arith.constant 0 : index
    %c0_63 = arith.constant 0 : index
    %c0_64 = arith.constant 0 : index
    %c0_65 = arith.constant 0 : index
    %c0_66 = arith.constant 0 : index
    %97 = vector.load %arg14[%c0_62, %c0_63, %c0_64, %c0_65, %c0_66] : memref<1x4x2x8x8xf32, #tpu.memory_space<vmem>>, vector<1x4x1x8x8xf32>
    %98 = vector.shape_cast %97 : vector<1x4x1x8x8xf32> to vector<4x8x8xf32>
    %99 = vector.shape_cast %96 : vector<4x8x8xf32> to vector<1x4x1x8x8xf32>
    tpu.vector_store %arg14[%c0_62, %c0_63, %c0_64, %c0_65, %c0_66], %99 {strides = array<i32>} : memref<1x4x2x8x8xf32, #tpu.memory_space<vmem>>, vector<1x4x1x8x8xf32>,
    %100 = vector.extract_strided_slice %87 {offsets = [0, 1, 0, 0], sizes = [4, 1, 8, 8], strides = [1, 1, 1, 1]} : vector<4x2x8x8xf32> to vector<4x1x8x8xf32>
    %101 = vector.shape_cast %100 : vector<4x1x8x8xf32> to vector<4x8x8xf32>
    %102 = arith.addf %13, %101 : vector<4x8x8xf32>
    %103 = vector.shape_cast %88 : vector<1x8xf32> to vector<1x1x8xf32>
    %104 = vector.broadcast %103 : vector<1x1x8xf32> to vector<4x8x8xf32>
    %105 = arith.addf %102, %104 : vector<4x8x8xf32>
    %cst_67 = arith.constant 0.000000e+00 : f32
    %106 = vector.broadcast %cst_67 : f32 to vector<4x8x8xf32>
    %107 = arith.maximumf %105, %106 : vector<4x8x8xf32>
    %c0_68 = arith.constant 0 : index
    %c0_69 = arith.constant 0 : index
    %c1_70 = arith.constant 1 : index
    %c0_71 = arith.constant 0 : index
    %c0_72 = arith.constant 0 : index
    %108 = vector.load %arg14[%c0_68, %c0_69, %c1_70, %c0_71, %c0_72] : memref<1x4x2x8x8xf32, #tpu.memory_space<vmem>>, vector<1x4x1x8x8xf32>
    %109 = vector.shape_cast %108 : vector<1x4x1x8x8xf32> to vector<4x8x8xf32>
    %110 = vector.shape_cast %107 : vector<4x8x8xf32> to vector<1x4x1x8x8xf32>
    tpu.vector_store %arg14[%c0_68, %c0_69, %c1_70, %c0_71, %c0_72], %110 {strides = array<i32>} : memref<1x4x2x8x8xf32, #tpu.memory_space<vmem>>, vector<1x4x1x8x8xf32>,
    return
  }
  func.func @transform_0(%arg0: i32, %arg1: i32) -> (i32, i32, i32, i32) {
    %c0_i32 = arith.constant 0 : i32
    %c0_i32_0 = arith.constant 0 : i32
    %c0_i32_1 = arith.constant 0 : i32
    return %arg0, %arg1, %c0_i32, %c0_i32_0 : i32, i32, i32, i32
  }
  func.func @transform_1(%arg0: i32, %arg1: i32) -> (i32, i32, i32, i32) {
    %c0_i32 = arith.constant 0 : i32
    %c0_i32_0 = arith.constant 0 : i32
    %c0_i32_1 = arith.constant 0 : i32
    return %arg0, %arg1, %c0_i32, %c0_i32_0 : i32, i32, i32, i32
  }
  func.func @transform_2(%arg0: i32, %arg1: i32) -> (i32, i32, i32, i32, i32) {
    %c0_i32 = arith.constant 0 : i32
    %c0_i32_0 = arith.constant 0 : i32
    %c0_i32_1 = arith.constant 0 : i32
    %c0_i32_2 = arith.constant 0 : i32
    return %arg0, %c0_i32, %arg1, %c0_i32_0, %c0_i32_1 : i32, i32, i32, i32, i32
  }
  func.func @transform_3(%arg0: i32, %arg1: i32) -> (i32, i32, i32) {
    %c0_i32 = arith.constant 0 : i32
    %c0_i32_0 = arith.constant 0 : i32
    %c0_i32_1 = arith.constant 0 : i32
    %c0_i32_2 = arith.constant 0 : i32
    return %c0_i32, %c0_i32_0, %c0_i32_1 : i32, i32, i32
  }
  func.func @transform_4(%arg0: i32, %arg1: i32) -> (i32, i32) {
    %c0_i32 = arith.constant 0 : i32
    %c0_i32_0 = arith.constant 0 : i32
    %c0_i32_1 = arith.constant 0 : i32
    return %c0_i32, %c0_i32_0 : i32, i32
  }
  func.func @transform_5(%arg0: i32, %arg1: i32) -> (i32, i32) {
    %c0_i32 = arith.constant 0 : i32
    %c0_i32_0 = arith.constant 0 : i32
    %c0_i32_1 = arith.constant 0 : i32
    return %c0_i32, %c0_i32_0 : i32, i32
  }
  func.func @transform_6(%arg0: i32, %arg1: i32) -> (i32, i32) {
    %c0_i32 = arith.constant 0 : i32
    %c0_i32_0 = arith.constant 0 : i32
    %c0_i32_1 = arith.constant 0 : i32
    return %c0_i32, %c0_i32_0 : i32, i32
  }
  func.func @transform_7(%arg0: i32, %arg1: i32) -> (i32, i32) {
    %c0_i32 = arith.constant 0 : i32
    %c0_i32_0 = arith.constant 0 : i32
    %c0_i32_1 = arith.constant 0 : i32
    return %c0_i32, %c0_i32_0 : i32, i32
  }
  func.func @transform_8(%arg0: i32, %arg1: i32) -> (i32, i32, i32) {
    %c0_i32 = arith.constant 0 : i32
    %c0_i32_0 = arith.constant 0 : i32
    %c0_i32_1 = arith.constant 0 : i32
    %c0_i32_2 = arith.constant 0 : i32
    return %c0_i32, %c0_i32_0, %c0_i32_1 : i32, i32, i32
  }
  func.func @transform_9(%arg0: i32, %arg1: i32) -> (i32, i32) {
    %c0_i32 = arith.constant 0 : i32
    %c0_i32_0 = arith.constant 0 : i32
    %c0_i32_1 = arith.constant 0 : i32
    return %c0_i32, %c0_i32_0 : i32, i32
  }
  func.func @transform_10(%arg0: i32, %arg1: i32) -> (i32, i32, i32) {
    %c0_i32 = arith.constant 0 : i32
    %c0_i32_0 = arith.constant 0 : i32
    %c0_i32_1 = arith.constant 0 : i32
    %c0_i32_2 = arith.constant 0 : i32
    return %c0_i32, %c0_i32_0, %c0_i32_1 : i32, i32, i32
  }
  func.func @transform_11(%arg0: i32, %arg1: i32) -> (i32, i32) {
    %c0_i32 = arith.constant 0 : i32
    %c0_i32_0 = arith.constant 0 : i32
    %c0_i32_1 = arith.constant 0 : i32
    return %c0_i32, %c0_i32_0 : i32, i32
  }
  func.func @transform_12(%arg0: i32, %arg1: i32) -> (i32, i32, i32, i32, i32) {
    %c0_i32 = arith.constant 0 : i32
    %c0_i32_0 = arith.constant 0 : i32
    %c0_i32_1 = arith.constant 0 : i32
    %c0_i32_2 = arith.constant 0 : i32
    return %arg0, %arg1, %c0_i32, %c0_i32_0, %c0_i32_1 : i32, i32, i32, i32, i32
  }
}

</mosaic_0001>

<bundles_post_ra>
// kernel: bifusion_forward.1
= control target key start
LH: loop header
LB: loop body
LE: loop exit
PB: predicated region body
PF: predicated region fallthrough
CT: control target
= control target key end

     0   :  { %s2134_s0 = inlined_call_operand.vmem [shape: bf16[2,8,8,4], index: 0, kind: input, shape index: {}]   ;;  %s2135_s1 = inlined_call_operand.vmem [shape: bf16[2,16,8,8], index: 1, kind: input, shape index: {}]   ;;  %s2136_s2 = inlined_call_operand.vmem [shape: bf16[2,2,16,8,32], index: 2, kind: input, shape index: {}]   ;;  %s2137_s3 = inlined_call_operand.vmem [shape: bf16[2,4,8], index: 3, kind: input, shape index: {}]   ;;  %s2138_s4 = inlined_call_operand.vmem [shape: bf16[8,8], index: 4, kind: input, shape index: {}]   ;;  %s2139_s5 = inlined_call_operand.vmem [shape: f32[1,8], index: 5, kind: input, shape index: {}]   ;;  %s2140_s6 = inlined_call_operand.vmem [shape: bf16[32,16], index: 6, kind: input, shape index: {}]   ;;  %s2141_s7 = inlined_call_operand.vmem [shape: f32[1,16], index: 7, kind: input, shape index: {}]   ;;  %s2142_s8 = inlined_call_operand.vmem [shape: bf16[3,16,16], index: 8, kind: input, shape index: {}]   ;;  %s2143_s9 = inlined_call_operand.vmem [shape: f32[1,8], index: 9, kind: input, shape index: {}]   ;;  %s2144_s10 = inlined_call_operand.vmem [shape: bf16[2,8,8], index: 10, kind: input, shape index: {}]   ;;  %s2145_s11 = inlined_call_operand.vmem [shape: f32[1,8], index: 11, kind: input, shape index: {}]   ;;  %s2146_s12 = inlined_call_operand.vmem [shape: f32[2,8,2,8,8], index: 12, kind: output, shape index: {}]  }
   0x1   :  { %2153 = sst [smem:[#allocation11_spill]] %s2136_s2 }
   0x2   :  { %2154 = sst [smem:[#allocation12_spill]] %s2143_s9 }
   0x3   :  { %2155 = sst [smem:[#allocation13_spill]] %s2145_s11 }
   0x4   :  { %s1856_s21 = smov 0   ;;  %s1858_s22 = smov 0  }
   0x5   :  { %s1860_s23 = smov 0   ;;  %s1862_s24 = smov 0  }
   0x6   :  { %s1864_s25 = smov 0   ;;  %s1866_s26 = smov 0  }
   0x7   :  { %s1868_s27 = smov 0  }
   0x8 LB: > { %2156 = sst [smem:[#allocation4_spill]] %s1767_s22  ;;  %s31_s28 = sadd.s32 1, %s1779_s25  ;;  %s1787_s27 = sphi %s1868_s27, %s22_s27   ;;  %s1783_s26 = sphi %s1866_s26, %s2172_s26   ;;  %s1779_s25 = sphi %s1864_s25, %s2171_s25   ;;  %s1775_s24 = sphi %s1862_s24, %s2170_s24   ;;  %s1771_s23 = sphi %s1860_s23, %s2169_s23   ;;  %s1767_s22 = sphi %s1858_s22, %s2168_s22   ;;  %s1763_s21 = sphi %s1856_s21, %s2167_s21  }
   0x9   : > { %2157 = sst [smem:[#allocation5_spill]] %s1779_s25  ;;  %p32_p0 = scmp.ge.s32.totalorder %s31_s28, 2 }
   0xa   : > { %2158 = sst [smem:[#allocation6_spill]] %s1783_s26  ;;  %s34_s29 = sadd.s32 1, %s1783_s26 }
   0xb   : > { %2159 = sst [smem:[#allocation7_spill]] %s1787_s27  ;;  %p106_p1 = scmp.ne.s32.totalorder %s1767_s22, %s1763_s21 }
   0xc   : > { %p107_p2 = scmp.eq.s32.totalorder %s1787_s27, 0  ;;  %s2174_s28 = smov (%p32_p0, %s31_s28), 0 }
   0xd   : > { %2160 = sst [smem:[#allocation8_spill]] %s2174_s28  ;;  %s2176_s29 = smov (!%p32_p0, %s34_s29), %s1783_s26 }
   0xe   : > { %p108_p3 = por %p107_p2, %p106_p1  ;;  %p36_p4 = scmp.ge.s32.totalorder %s2176_s29, 2 }
   0xf   : > { %s95_s30 = ssub.s32 %s1779_s25, %s2174_s28  ;;  %s99_s15 = sadd.s32 1, %s1767_s22 }
  0x10   : > { %s2178_s29 = smov (%p36_p4, %s2176_s29), 0  ;;  %p1508_p6 = scmp.ge.s32.totalorder %s1787_s27, 4 }
  0x11   : > { %2161 = sst [smem:[#allocation9_spill]] %s2178_s29  ;;  %s94_s13 = ssub.s32 %s1783_s26, %s2178_s29 }
  0x12   : > { %s96_s14 = sor.u32 %s95_s30, %s94_s13 }
  0x13   : > { %p97_p5 = scmp.eq.s32.totalorder %s96_s14, 0  ;;  %376 = sbr.rel (%p1508_p6) target bundleno = 42 (0x2a), region = 52 }
  0x15   : > { %s1907_s16 = scalar_select %p97_p5, %s1767_s22, %s99_s15  }
  0x17   : > { %2162 = sst [smem:[#allocation10_spill]] %s1907_s16 }
  0x18   : > { %405 = sbr.rel (!%p108_p3) target bundleno = 42 (0x2a), region = 64  ;;  %s407_s17 = sand.u32 (%p108_p3), 1, %s1767_s22  }
  0x19   : > { %s1510_s18 = sshll.u32 (%p108_p3), %s1779_s25, 3  ;;  %s1509_s19 = sshll.u32 (%p108_p3), %s407_s17, 6 }
  0x1a   : > { %s1511_s20 = sshll.u32 (%p108_p3), %s1783_s26, 5  ;;  %s2163_s2 = sld [smem:[#allocation11_spill]] (%p108_p3) }
  0x1b   : > { %s412_s28 = sadd.s32 (%p108_p3), %s1511_s20, %s1510_s18  ;;  %s409_s13 = scalar_lea.vmem (%p108_p3), [#allocation3], %s1509_s19 }
  0x1c   : > { %s1512_s11 = sshll.u32 (%p108_p3), %s412_s28, 2 }
  0x20   : > { %s414_s30 = scalar_lea.vmem %s2163_s2, %s1512_s11 }
  0x21   : > { %v431_v0 = vld [vmem:[%s414_s30] sm:$0xff]   ;;  %v435_v1 = vld [vmem:[%s414_s30 + $0x8] sm:$0xff]   ;;  %v439_v2 = vld [vmem:[%s414_s30 + $0x10] sm:$0xff]  }
  0x22   : > { %432 = vst [vmem:[%s409_s13] sm:$0xff] %v431_v0   ;;  %v443_v3 = vld [vmem:[%s414_s30 + $0x18] sm:$0xff]   ;;  %v447_v4 = vld [vmem:[%s414_s30 + $0x40] sm:$0xff]   ;;  %v451_v5 = vld [vmem:[%s414_s30 + $0x48] sm:$0xff]  }
  0x23   : > { %436 = vst [vmem:[%s409_s13 + $0x8] sm:$0xff] %v435_v1   ;;  %v455_v6 = vld [vmem:[%s414_s30 + $0x50] sm:$0xff]   ;;  %v459_v7 = vld [vmem:[%s414_s30 + $0x58] sm:$0xff]  }
  0x24   : > { %440 = vst [vmem:[%s409_s13 + $0x10] sm:$0xff] %v439_v2  }
  0x25   : > { %444 = vst [vmem:[%s409_s13 + $0x18] sm:$0xff] %v443_v3  }
  0x26   : > { %448 = vst [vmem:[%s409_s13 + $0x20] sm:$0xff] %v447_v4  }
  0x27   : > { %452 = vst [vmem:[%s409_s13 + $0x28] sm:$0xff] %v451_v5  }
  0x28   : > { %456 = vst [vmem:[%s409_s13 + $0x30] sm:$0xff] %v455_v6  }
  0x29   : > { %460 = vst [vmem:[%s409_s13 + $0x38] sm:$0xff] %v459_v7  }
  0x2a PF: > { %p1513_p7 = scmp.ge.s32.totalorder %s1787_s27, 1  ;;  %p517_p8 = scmp.lt.s32.totalorder %s1787_s27, 5 }
  0x2c   : > { %p518_p9 = pnand %p1513_p7, %p517_p8 }
  0x2d   : > { %s524_s9 = sand.u32 (!%p518_p9), 1, %s1763_s21   ;;  %s1515_s11 = sshll.u32 (!%p518_p9), %s1771_s23, 2 }
  0x2e   : > { %521 = sbr.rel (%p518_p9) target bundleno = 756 (0x2f4), region = 105  ;;  %s1514_s28 = sshll.u32 (!%p518_p9), %s524_s9, 6 }
  0x2f   : > { %p589_p10 = scmp.lt.s32.totalorder (!%p518_p9), %s1775_s24, 1  ;;  %p591_p11 = scmp.lt.s32.totalorder (!%p518_p9), %s1515_s11, 7 }
  0x30   : > { %s1518_s14 = sshll.u32 (!%p518_p9), %s1771_s23, 3  ;;  %p1525_p13 = scmp.ne.s32.totalorder (!%p518_p9), %s1771_s23, 0 }
  0x31   : > { %p601_p12 = scmp.lt.s32.totalorder (!%p518_p9), %s1518_s14, 15 }
  0x33   : > { %s2180_s24 = smov (!%p589_p10, %s1775_s24), 1  ;;  %s2182_s11 = smov (!%p591_p11, %s1515_s11), 7 }
  0x34   : > { %s1516_s29 = sshll.u32 %s2180_s24, 3  ;;  %s1519_s18 = sshll.u32 %s2180_s24, 4 }
  0x35   : > { %s594_s15 = sadd.s32 %s1516_s29, %s2182_s11  ;;  %s1522_s13 = sshll.u32 %s2182_s11, 1 }
  0x36   : > { %s1517_s17 = sshll.u32 %s594_s15, 2  ;;  %s2184_s14 = smov (!%p601_p12, %s1518_s14), 15 }
  0x37   : > { %s1926_s30 = scalar_lea.vmem %s2134_s0, %s1517_s17  ;;  %s616_s21 = sadd.s32 %s1522_s13, %s1519_s18 }
  0x38   : > { %s604_s2 = sadd.s32 %s1519_s18, %s2184_s14  ;;  %s1524_s9 = sshll.u32 %s616_s21, 3 }
  0x39   : > { %s1520_s26 = sshll.u32 %s604_s2, 2  ;;  %s1931_s22 = scalar_lea.vmem %s2146_s12, %s1524_s9 }
  0x3a   : > { %s1936_s24 = scalar_lea.vmem %s2135_s1, %s1520_s26  ;;  %s1938_s15 = scalar_lea.vmem [#allocation3], %s1514_s28 }
  0x3b   : > { %624 = sbr.rel (%p1525_p13) target bundleno = 66 (0x42), region = 113 }
  0x40   : > { %vm625_vm0 = vcmask 130048   ;;  %v1789_v8 = vmov 0.0  }
  0x41   : > { %626 = vst.msk [vmem:[#allocation2] sm:$0xff] %vm625_vm0, %v1789_v8 }
  0x42 PF: > { %vm649_vm1 = vcmask 1041408   ;;  %v1536_v9 = vld [vmem:[%s2137_s3 + $0x2] sm:$0x3]  ;;  %v1665_v10 = vld [vmem:[%s2140_s6 + $0x8] sm:$0xff]  ;;  %vm642_vm2 = vcmask 31744   ;;  %vm859_vm3 = vcmask 261120  }
  0x43   : > { %v675_v11 = vsel %vm649_vm1, %v1536_v9, 0  ;;  %v1651_v12 = vld [vmem:[%s1926_s30 + $0x8] sm:$0xff]  ;;  %v1664_v13 = vld [vmem:[%s2140_s6] sm:$0xff]  ;;  %v1657_v15 = vld [vmem:[%s1938_s15 + $0x8] sm:$0xff]  ;;  %vm742_vm4 = vcmask 1043456   ;;  %vm729_vm5 = vcmask 64512  }
  0x44   : > { %1670 = vmatpush.bf16.msra.mxu3 %v675_v11  ;;  %684 = vmatpush.bf16.msra.mxu1 %v675_v11  ;;  %v1656_v14 = vld [vmem:[%s1938_s15] sm:$0xff]  ;;  %v1658_v16 = vld [vmem:[%s1938_s15 + $0x10] sm:$0xff]  ;;  %v1659_v17 = vld [vmem:[%s1938_s15 + $0x18] sm:$0xff]  ;;  %vm997_vm6 = vcmask 130048   ;;  %s1790_s25 = smov 120   ;;  %s2164_s28 = sld [smem:[#allocation12_spill]] }
  0x45   : > { %v1660_v18 = vld [vmem:[%s1938_s15 + $0x20] sm:$0xff]  ;;  %v1661_v19 = vld [vmem:[%s1938_s15 + $0x28] sm:$0xff]  ;;  %v631_v20 = vld [vmem:[%s2137_s3] sm:$0x3]  ;;  %s2165_s18 = sld [smem:[#allocation13_spill]] }
  0x46   : > { %v651_v21 = vsel %vm649_vm1, %v631_v20, 0  ;;  %v1662_v22 = vld [vmem:[%s1938_s15 + $0x30] sm:$0xff]  ;;  %v1650_v23 = vld [vmem:[%s1926_s30] sm:$0xff]  ;;  %v1666_v28 = vld [vmem:[%s2142_s8 + $0x8] sm:$0xff] }
  0x47   : > { %1538 = vmatmul.msk.bf16.vlgmr.msra.gmra.mxu3 %vm642_vm2, %v1651_v12  ;;  %1669 = vmatpush.bf16.msra.mxu2 %v651_v21  ;;  %v704_v24 = vld [vmem:[%s2138_s4] sm:$0xf]  ;;  %v1653_v30 = vld [vmem:[%s1936_s24 + $0x8] sm:$0xff]  ;;  %v1654_v36 = vld [vmem:[%s1936_s24 + $0x10] sm:$0xff] }
  0x48   : > { %890 = vmatpush.bf16.msrb.mxu3 %v1665_v10  ;;  %660 = vmatpush.bf16.msra.mxu0 %v651_v21  ;;  %v744_v25 = vsel %vm742_vm4, %v704_v24, 0  ;;  %v1652_v26 = vld [vmem:[%s1936_s24] sm:$0xff]  ;;  %v1655_v48 = vld [vmem:[%s1936_s24 + $0x18] sm:$0xff]  ;;  %v1667_v61 = vld [vmem:[%s2142_s8 + $0x10] sm:$0xff] }
  0x49   : > { %1537 = vmatmul.msk.bf16.vlgmr.msra.gmra.mxu1 %vm642_vm2, %v1650_v23  ;;  %v1663_v27 = vld [vmem:[%s1938_s15 + $0x38] sm:$0xff] }
  0x4a   : > { %1535 = vmatmul.msk.bf16.vlgmr.msra.gmra.mxu2 %vm642_vm2, %v1651_v12  ;;  %1084 = vmatpush.bf16.msrb.mxu1 %v1666_v28  ;;  %v1668_v31 = vld [vmem:[%s2142_s8] sm:$0xff] }
  0x4b   : > { %1534 = vmatmul.msk.bf16.vlgmr.msra.gmra.mxu0 %vm642_vm2, %v1650_v23  ;;  %753 = vmatpush.bf16.msrb.mxu2 %v744_v25  ;;  %v1998_v33 = vld [vmem:[%s2141_s7] ss:$0 sm:$0xff] }
  0x4c   : > { %891 = vmatpush.bf16.msrb.mxu3 %v1664_v13  ;;  %1017 = vmatpush.bf16.msrb.mxu0 %v1667_v61 }
  0x4f   : > { %1121 = vmatpush.bf16.msra.mxu2 %v1668_v31 }
  0x57   : > { %1599 = vmatmul.msk.bf16.vlgmr.msrb.gmra.mxu3 %vm859_vm3, %v1656_v14 }
  0x5a   : > { %1555 = vmatmul.msk.bf16.vlgmr.msrb.gmra.mxu2 %vm729_vm5, %v1652_v26 }
  0x67   : > { %1600 = vmatmul.msk.bf16.gmra.mxu3 %vm859_vm3, %v1657_v15 }
  0x6a   : > { %1556 = vmatmul.msk.bf16.gmra.mxu2 %vm729_vm5, %v1653_v30 }
  0x77   : > { %1601 = vmatmul.msk.bf16.gmra.mxu3 %vm859_vm3, %v1658_v16 }
  0x7a   : > { %1557 = vmatmul.msk.bf16.gmra.mxu2 %vm729_vm5, %v1654_v36 }
  0x87   : > { %1602 = vmatmul.msk.bf16.gmra.mxu3 %vm859_vm3, %v1659_v17 }
  0x8a   : > { %1558 = vmatmul.msk.bf16.gmra.mxu2 %vm729_vm5, %v1655_v48 }
  0x97   : > { %1603 = vmatmul.msk.bf16.gmra.mxu3 %vm859_vm3, %v1660_v18 }
  0xa7   : > { %1604 = vmatmul.msk.bf16.gmra.mxu3 %vm859_vm3, %v1661_v19 }
  0xb7   : > { %1605 = vmatmul.msk.bf16.gmra.mxu3 %vm859_vm3, %v1662_v22 }
  0xc7   : > { %1606 = vmatmul.msk.bf16.gmra.mxu3 %vm859_vm3, %v1663_v27 }
  0xca   : > { %v1986_v29 = vpop.f32.mrf.mxu3 }
  0xcd   : > { %v2025_v36 = vpop.f32.mrf.mxu2 }
  0xd2   : > { %v1993_v32 = vpop.f32.mrf.mxu3 }
  0xda   : > { %v893_v34 = vpop.f32.mrf.mxu3 }
  0xdb   : > { %v894_v35 = vadd.f32 %v1998_v33, %v893_v34 }
  0xdd   : > { %v933_v37 = vmax.f32 %v894_v35, 0.0 }
  0xdf   : > { %v949_v40 = vpack.c.bf16 %v933_v37, %v933_v37 }
  0xe1   : > { %v1047_v43 = vunpack.c.l.b16 %v949_v40 }
  0xe2   : > { %v895_v38 = vpop.f32.mrf.mxu3 }
  0xe3   : > { %v896_v39 = vadd.f32 %v1998_v33, %v895_v38 }
  0xe5   : > { %v934_v41 = vmax.f32 %v896_v39, 0.0 }
  0xe7   : > { %v950_v42 = vpack.c.bf16 %v934_v41, %v934_v41 }
  0xe9   : > { %v1048_v44 = vunpack.c.l.b16 %v950_v42 }
  0xea   : > { %v898_v45 = vpop.f32.mrf.mxu3 }
  0xeb   : > { %v1055_v46 = vpack.c.b16 %v1048_v44, %v1047_v43  ;;  %v899_v47 = vadd.f32 %v1998_v33, %v898_v45  ;;  %v2027_v44 = vpop.f32.mrf.mxu2 }
  0xed   : > { %1623 = vmatmul.msk.bf16.vlgmr.msrb.gmra.mxu1 %vm997_vm6, %v1055_v46  ;;  %v935_v49 = vmax.f32 %v899_v47, 0.0 }
  0xef   : > { %v951_v52 = vpack.c.bf16 %v935_v49, %v935_v49 }
  0xf1   : > { %v1049_v55 = vunpack.c.l.b16 %v951_v52  ;;  %v1730_v52 = vld [vmem:[%s2139_s5] ss:$0 sm:$0xff] }
  0xf2   : > { %v900_v50 = vpop.f32.mrf.mxu3 }
  0xf3   : > { %v901_v51 = vadd.f32 %v1998_v33, %v900_v50  ;;  %v755_v49 = vpop.f32.mrf.mxu2 }
  0xf5   : > { %v936_v53 = vmax.f32 %v901_v51, 0.0 }
  0xf7   : > { %v952_v54 = vpack.c.bf16 %v936_v53, %v936_v53 }
  0xf9   : > { %v1050_v56 = vunpack.c.l.b16 %v952_v54 }
  0xfa   : > { %v903_v57 = vpop.f32.mrf.mxu3 }
  0xfb   : > { %v1056_v58 = vpack.c.b16 %v1050_v56, %v1049_v55  ;;  %v904_v59 = vadd.f32 %v1998_v33, %v903_v57  ;;  %v756_v56 = vadd.f32 %v1730_v52, %v755_v49  ;;  %v757_v61 = vpop.f32.mrf.mxu2 }
  0xfd   : > { %1624 = vmatmul.msk.bf16.gmra.mxu1 %vm997_vm6, %v1056_v58  ;;  %v937_v60 = vmax.f32 %v904_v59, 0.0  ;;  %v1238_v58 = vld [vmem:[%s2144_s10] sm:$0xf] }
  0xff   : > { %v953_v0 = vpack.c.bf16 %v937_v60, %v937_v60  ;;  %v1302_v60 = vsel %vm742_vm4, %v1238_v58, 0 }
 0x100   : > { %1311 = vmatpush.bf16.msra.mxu1 %v1302_v60 }
 0x101   : > { %v1051_v3 = vunpack.c.l.b16 %v953_v0  ;;  %v758_v0 = vadd.f32 %v1730_v52, %v757_v61 }
 0x102   : > { %v905_v62 = vpop.f32.mrf.mxu3 }
 0x103   : > { %v906_v63 = vadd.f32 %v1998_v33, %v905_v62 }
 0x105   : > { %v938_v1 = vmax.f32 %v906_v63, 0.0  ;;  %v775_v63 = vmax.f32 %v756_v56, 0.0 }
 0x107   : > { %v954_v2 = vpack.c.bf16 %v938_v1, %v938_v1  ;;  %v776_v1 = vmax.f32 %v758_v0, 0.0 }
 0x109   : > { %v1052_v4 = vunpack.c.l.b16 %v954_v2 }
 0x10a   : > { %v908_v5 = vpop.f32.mrf.mxu3 }
 0x10b   : > { %v1057_v6 = vpack.c.b16 %v1052_v4, %v1051_v3  ;;  %v909_v7 = vadd.f32 %v1998_v33, %v908_v5  ;;  %v1234_v3 = vpack.c.bf16 %v776_v1, %v775_v63  ;;  %v1635_v63 = vld [vmem:[%s2144_s10 + $0x4] sm:$0xf] }
 0x10c   : > { %v1258_v1 = vsel %vm742_vm4, %v1635_v63, 0 }
 0x10d   : > { %1625 = vmatmul.msk.bf16.gmra.mxu1 %vm997_vm6, %v1057_v6  ;;  %v939_v8 = vmax.f32 %v909_v7, 0.0  ;;  %v760_v6 = vpop.f32.mrf.mxu2  ;;  %1267 = vmatpush.bf16.msra.mxu0 %v1258_v1 }
 0x10f   : > { %v955_v11 = vpack.c.bf16 %v939_v8, %v939_v8 }
 0x111   : > { %v1053_v14 = vunpack.c.l.b16 %v955_v11 }
 0x112   : > { %v910_v9 = vpop.f32.mrf.mxu3 }
 0x113   : > { %v911_v10 = vadd.f32 %v1998_v33, %v910_v9 }
 0x115   : > { %v940_v12 = vmax.f32 %v911_v10, 0.0 }
 0x117   : > { %v956_v13 = vpack.c.bf16 %v940_v12, %v940_v12  ;;  %v761_v12 = vadd.f32 %v1730_v52, %v760_v6 }
 0x119   : > { %v1054_v15 = vunpack.c.l.b16 %v956_v13 }
 0x11a   : > { %v913_v16 = vpop.f32.mrf.mxu3 }
 0x11b   : > { %v1058_v17 = vpack.c.b16 %v1054_v15, %v1053_v14  ;;  %v914_v18 = vadd.f32 %v1998_v33, %v913_v16  ;;  %v762_v14 = vpop.f32.mrf.mxu2  ;;  %v777_v15 = vmax.f32 %v761_v12, 0.0 }
 0x11c   : > { %v763_v16 = vadd.f32 %v1730_v52, %v762_v14 }
 0x11d   : > { %1626 = vmatmul.msk.bf16.gmra.mxu1 %vm997_vm6, %v1058_v17  ;;  %v941_v19 = vmax.f32 %v914_v18, 0.0 }
 0x11e   : > { %v778_v17 = vmax.f32 %v763_v16, 0.0 }
 0x11f   : > { %v957_v22 = vpack.c.bf16 %v941_v19, %v941_v19 }
 0x120   : > { %v1235_v18 = vpack.c.bf16 %v778_v17, %v777_v15 }
 0x121   : > { %v979_v25 = vunpack.c.l.b16 %v957_v22 }
 0x122   : > { %v915_v20 = vpop.f32.mrf.mxu3 }
 0x123   : > { %v916_v21 = vadd.f32 %v1998_v33, %v915_v20 }
 0x125   : > { %v942_v23 = vmax.f32 %v916_v21, 0.0 }
 0x127   : > { %v958_v24 = vpack.c.bf16 %v942_v23, %v942_v23 }
 0x129   : > { %v980_v26 = vunpack.c.l.b16 %v958_v24 }
 0x12a   : > { %v918_v27 = vpop.f32.mrf.mxu3 }
 0x12b   : > { %v987_v28 = vpack.c.b16 %v980_v26, %v979_v25  ;;  %v919_v30 = vadd.f32 %v1998_v33, %v918_v27 }
 0x12d   : > { %1615 = vmatmul.msk.bf16.vlgmr.msrb.gmra.mxu0 %vm997_vm6, %v987_v28  ;;  %1631 = vmatmul.msk.bf16.vlgmr.msra.gmra.mxu2 %vm997_vm6, %v987_v28  ;;  %v943_v31 = vmax.f32 %v919_v30, 0.0 }
 0x12e   : > { %1640 = vmatmul.msk.bf16.vlgmr.msra.gmra.mxu1 %vm729_vm5, %v1234_v3 }
 0x12f   : > { %v959_v37 = vpack.c.bf16 %v943_v31, %v943_v31 }
 0x131   : > { %v981_v40 = vunpack.c.l.b16 %v959_v37 }
 0x132   : > { %v920_v34 = vpop.f32.mrf.mxu3 }
 0x133   : > { %v921_v35 = vadd.f32 %v1998_v33, %v920_v34 }
 0x135   : > { %v944_v38 = vmax.f32 %v921_v35, 0.0  ;;  %v2050_v35 = vpop.f32.mrf.mxu1 }
 0x137   : > { %v960_v39 = vpack.c.bf16 %v944_v38, %v944_v38  ;;  %v2054_v38 = vpop.f32.mrf.mxu0 }
 0x139   : > { %v982_v41 = vunpack.c.l.b16 %v960_v39 }
 0x13a   : > { %v923_v42 = vpop.f32.mrf.mxu3 }
 0x13b   : > { %v988_v43 = vpack.c.b16 %v982_v41, %v981_v40  ;;  %v924_v45 = vadd.f32 %v1998_v33, %v923_v42 }
 0x13d   : > { %1616 = vmatmul.msk.bf16.gmra.mxu0 %vm997_vm6, %v988_v43  ;;  %1632 = vmatmul.msk.bf16.gmra.mxu2 %vm997_vm6, %v988_v43  ;;  %v945_v46 = vmax.f32 %v924_v45, 0.0  ;;  %v2052_v37 = vpop.f32.mrf.mxu1  ;;  %v1143_v43 = vld [vmem:[#allocation2] sm:$0xff] }
 0x13e   : > { %1641 = vmatmul.msk.bf16.gmra.mxu1 %vm729_vm5, %v1235_v18 }
 0x13f   : > { %v961_v50 = vpack.c.bf16 %v945_v46, %v945_v46  ;;  %v2056_v40 = vpop.f32.mrf.mxu0 }
 0x141   : > { %v983_v54 = vunpack.c.l.b16 %v961_v50 }
 0x142   : > { %v925_v47 = vpop.f32.mrf.mxu3 }
 0x143   : > { %v926_v48 = vadd.f32 %v1998_v33, %v925_v47 }
 0x145   : > { %v946_v51 = vmax.f32 %v926_v48, 0.0 }
 0x147   : > { %v962_v53 = vpack.c.bf16 %v946_v51, %v946_v51 }
 0x149   : > { %v984_v55 = vunpack.c.l.b16 %v962_v53 }
 0x14a   : > { %v928_v57 = vpop.f32.mrf.mxu3 }
 0x14b   : > { %v989_v59 = vpack.c.b16 %v984_v55, %v983_v54  ;;  %v929_v62 = vadd.f32 %v1998_v33, %v928_v57 }
 0x14d   : > { %1617 = vmatmul.msk.bf16.gmra.mxu0 %vm997_vm6, %v989_v59  ;;  %1633 = vmatmul.msk.bf16.gmra.mxu2 %vm997_vm6, %v989_v59  ;;  %v947_v2 = vmax.f32 %v929_v62, 0.0 }
 0x14f   : > { %v963_v7 = vpack.c.bf16 %v947_v2, %v947_v2 }
 0x151   : > { %v985_v10 = vunpack.c.l.b16 %v963_v7 }
 0x152   : > { %v930_v4 = vpop.f32.mrf.mxu3 }
 0x153   : > { %v931_v5 = vadd.f32 %v1998_v33, %v930_v4  ;;  %v765_v33 = vpop.f32.mrf.mxu2 }
 0x154   : > { %v766_v19 = vadd.f32 %v1730_v52, %v765_v33 }
 0x155   : > { %v948_v8 = vmax.f32 %v931_v5, 0.0 }
 0x156   : > { %v779_v21 = vmax.f32 %v766_v19, 0.0  ;;  %v1193_v19 = vlaneseq }
 0x157   : > { %v964_v9 = vpack.c.bf16 %v948_v8, %v948_v8 }
 0x159   : > { %v986_v11 = vunpack.c.l.b16 %v964_v9 }
 0x15b   : > { %v990_v13 = vpack.c.b16 %v986_v11, %v985_v10  ;;  %v767_v20 = vpop.f32.mrf.mxu2 }
 0x15c   : > { %v768_v22 = vadd.f32 %v1730_v52, %v767_v20  ;;  %v1194_v20 = vshrl.u32 %v1193_v19, 7 }
 0x15d   : > { %1618 = vmatmul.msk.bf16.gmra.mxu0 %vm997_vm6, %v990_v13  ;;  %1634 = vmatmul.msk.bf16.gmra.mxu2 %vm997_vm6, %v990_v13 }
 0x15e   : > { %v780_v23 = vmax.f32 %v768_v22, 0.0  ;;  %vm1195_vm7 = vcmp.eq.s32.totalorder %v1194_v20, 0 }
 0x160   : > { %v1236_v24 = vpack.c.bf16 %v780_v23, %v779_v21 }
 0x162   : > { %1642 = vmatmul.msk.bf16.gmra.mxu1 %vm729_vm5, %v1236_v24  ;;  %v1731_v24 = vld [vmem:[%s2164_s28] ss:$0 sm:$0xff] }
 0x163   : > { %v770_v25 = vpop.f32.mrf.mxu2 }
 0x164   : > { %v771_v26 = vadd.f32 %v1730_v52, %v770_v25 }
 0x166   : > { %v781_v28 = vmax.f32 %v771_v26, 0.0 }
 0x16a   : > { %v1086_v39 = vpop.f32.mrf.mxu1 }
 0x16b   : > { %v772_v27 = vpop.f32.mrf.mxu2 }
 0x16c   : > { %v773_v30 = vadd.f32 %v1730_v52, %v772_v27 }
 0x16e   : > { %v782_v31 = vmax.f32 %v773_v30, 0.0 }
 0x170   : > { %v1237_v34 = vpack.c.bf16 %v782_v31, %v781_v28 }
 0x172   : > { %1643 = vmatmul.msk.bf16.gmra.mxu1 %vm729_vm5, %v1237_v34  ;;  %v1088_v41 = vpop.f32.mrf.mxu1 }
 0x17a   : > { %v1091_v47 = vpop.f32.mrf.mxu1 }
 0x182   : > { %v1093_v53 = vpop.f32.mrf.mxu1 }
 0x18a   : > { %v1096_v60 = vpop.f32.mrf.mxu1 }
 0x192   : > { %v1098_v4 = vpop.f32.mrf.mxu1 }
 0x19a   : > { %v1101_v9 = vpop.f32.mrf.mxu1 }
 0x1a2   : > { %v1103_v15 = vpop.f32.mrf.mxu1 }
 0x1aa   : > { %v1019_v42 = vpop.f32.mrf.mxu0 }
 0x1ab   : > { %v1087_v45 = vadd.f32 %v1086_v39, %v1019_v42 }
 0x1ad   : > { %v1145_v46 = vadd.f32 %v1143_v43, %v1087_v45 }
 0x1af   : > { %1161 = vrot.lane.b32.xlu0 %v1145_v46, %s1790_s25 }
 0x1b0   : > { %v1123_v48 = vpop.f32.mrf.mxu2 }
 0x1b2   : > { %v1021_v49 = vpop.f32.mrf.mxu0 }
 0x1b3   : > { %v1089_v50 = vadd.f32 %v1088_v41, %v1021_v49 }
 0x1b5   : > { %v1146_v51 = vadd.f32 %v1123_v48, %v1089_v50 }
 0x1b7   : > { %1163 = vrot.lane.b32.xlu0 %v1146_v51, %s1790_s25 }
 0x1b8   : > { %v1125_v52 = vpop.f32.mrf.mxu2 }
 0x1ba   : > { %v1024_v54 = vpop.f32.mrf.mxu0 }
 0x1bb   : > { %v1092_v55 = vadd.f32 %v1091_v47, %v1024_v54 }
 0x1bd   : > { %v1147_v56 = vadd.f32 %v1125_v52, %v1092_v55 }
 0x1bf   : > { %1165 = vrot.lane.b32.xlu1 %v1147_v56, %s1790_s25 }
 0x1c0   : > { %v1128_v57 = vpop.f32.mrf.mxu2 }
 0x1c2   : > { %v1026_v58 = vpop.f32.mrf.mxu0 }
 0x1c3   : > { %v1094_v59 = vadd.f32 %v1093_v53, %v1026_v58 }
 0x1c5   : > { %v1148_v61 = vadd.f32 %v1128_v57, %v1094_v59 }
 0x1c7   : > { %1167 = vrot.lane.b32.xlu1 %v1148_v61, %s1790_s25 }
 0x1c8   : > { %v1130_v62 = vpop.f32.mrf.mxu2 }
 0x1ca   : > { %v1029_v0 = vpop.f32.mrf.mxu0 }
 0x1cb   : > { %v1097_v2 = vadd.f32 %v1096_v60, %v1029_v0 }
 0x1cd   : > { %v1149_v3 = vadd.f32 %v1130_v62, %v1097_v2 }
 0x1cf   : > { %1169 = vrot.lane.b32.xlu2 %v1149_v3, %s1790_s25 }
 0x1d0   : > { %v1133_v5 = vpop.f32.mrf.mxu2 }
 0x1d2   : > { %v1031_v6 = vpop.f32.mrf.mxu0 }
 0x1d3   : > { %v1099_v7 = vadd.f32 %v1098_v4, %v1031_v6 }
 0x1d5   : > { %v1150_v8 = vadd.f32 %v1133_v5, %v1099_v7 }
 0x1d7   : > { %1171 = vrot.lane.b32.xlu2 %v1150_v8, %s1790_s25 }
 0x1d8   : > { %v1135_v10 = vpop.f32.mrf.mxu2 }
 0x1da   : > { %v1034_v11 = vpop.f32.mrf.mxu0 }
 0x1db   : > { %v1102_v12 = vadd.f32 %v1101_v9, %v1034_v11 }
 0x1dd   : > { %v1151_v13 = vadd.f32 %v1135_v10, %v1102_v12 }
 0x1df   : > { %1173 = vrot.lane.b32.xlu0 %v1151_v13, %s1790_s25 }
 0x1e0   : > { %v1138_v14 = vpop.f32.mrf.mxu2 }
 0x1e2   : > { %v1036_v16 = vpop.f32.mrf.mxu0 }
 0x1e3   : > { %v1104_v17 = vadd.f32 %v1103_v15, %v1036_v16 }
 0x1e5   : > { %v1152_v18 = vadd.f32 %v1138_v14, %v1104_v17 }
 0x1e7   : > { %1175 = vrot.lane.b32.xlu1 %v1152_v18, %s1790_s25 }
 0x1e8   : > { %v1140_v33 = vpop.f32.mrf.mxu2 }
 0x1e9   : > { %1144 = vst.msk [vmem:[#allocation2] sm:$0xff] %vm997_vm6, %v1140_v33 }
 0x221   : > { %v1162_v21 = vpop.permute.xlu0 %1161 }
 0x222   : > { %v1185_v22 = vrot.slane %v1162_v21, 7  ;;  %v1313_v21 = vpop.f32.mrf.mxu1 }
 0x224   : > { %v1198_v23 = vsel %vm1195_vm7, 0.0, %v1185_v22 }
 0x225   : > { %v1206_v25 = vadd.f32 %v1198_v23, %v1145_v46 }
 0x227   : > { %v1218_v30 = vadd.f32 %v1731_v24, %v1206_v25 }
 0x229   : > { %v1164_v26 = vpop.permute.xlu0 %1163  ;;  %v1226_v39 = vmax.f32 %v1218_v30, 0.0  ;;  %v1170_v47 = vpop.permute.xlu2 %1169 }
 0x22a   : > { %v1186_v27 = vrot.slane %v1164_v26, 7  ;;  %v1189_v60 = vrot.slane %v1170_v47, 7  ;;  %v1315_v22 = vpop.f32.mrf.mxu1 }
 0x22c   : > { %v1199_v28 = vsel %vm1195_vm7, 0.0, %v1186_v27  ;;  %v1202_v0 = vsel %vm1195_vm7, 0.0, %v1189_v60 }
 0x22d   : > { %v1207_v31 = vadd.f32 %v1199_v28, %v1146_v51  ;;  %v1210_v1 = vadd.f32 %v1202_v0, %v1149_v3 }
 0x22f   : > { %v1219_v34 = vadd.f32 %v1731_v24, %v1207_v31  ;;  %v1222_v4 = vadd.f32 %v1731_v24, %v1210_v1 }
 0x231   : > { %v1227_v41 = vmax.f32 %v1219_v34, 0.0  ;;  %v1166_v42 = vpop.permute.xlu1 %1165  ;;  %v1172_v54 = vpop.permute.xlu2 %1171  ;;  %v1230_v7 = vmax.f32 %v1222_v4, 0.0 }
 0x232   : > { %v1187_v43 = vrot.slane %v1166_v42, 7  ;;  %v1190_v57 = vrot.slane %v1172_v54, 7 }
 0x233   : > { %v1239_v45 = vpack.c.bf16 %v1227_v41, %v1226_v39 }
 0x234   : > { %v1200_v48 = vsel %vm1195_vm7, 0.0, %v1187_v43  ;;  %v1203_v63 = vsel %vm1195_vm7, 0.0, %v1190_v57 }
 0x235   : > { %1636 = vmatmul.msk.bf16.vlgmr.msra.gmra.mxu0 %vm729_vm5, %v1239_v45  ;;  %v1208_v49 = vadd.f32 %v1200_v48, %v1147_v56  ;;  %v1211_v56 = vadd.f32 %v1203_v63, %v1150_v8 }
 0x237   : > { %v1220_v53 = vadd.f32 %v1731_v24, %v1208_v49  ;;  %v1223_v2 = vadd.f32 %v1731_v24, %v1211_v56 }
 0x239   : > { %v1168_v50 = vpop.permute.xlu1 %1167  ;;  %v1228_v58 = vmax.f32 %v1220_v53, 0.0  ;;  %v1231_v5 = vmax.f32 %v1223_v2, 0.0 }
 0x23a   : > { %v1188_v46 = vrot.slane %v1168_v50, 7 }
 0x23b   : > { %v1241_v9 = vpack.c.bf16 %v1231_v5, %v1230_v7 }
 0x23c   : > { %v1201_v52 = vsel %vm1195_vm7, 0.0, %v1188_v46 }
 0x23d   : > { %v1209_v55 = vadd.f32 %v1201_v52, %v1148_v61 }
 0x23f   : > { %v1221_v51 = vadd.f32 %v1731_v24, %v1209_v55 }
 0x241   : > { %v1229_v59 = vmax.f32 %v1221_v51, 0.0 }
 0x243   : > { %v1240_v62 = vpack.c.bf16 %v1229_v59, %v1228_v58 }
 0x245   : > { %1637 = vmatmul.msk.bf16.gmra.mxu0 %vm729_vm5, %v1240_v62 }
 0x251   : > { %v1174_v6 = vpop.permute.xlu0 %1173 }
 0x252   : > { %v1191_v61 = vrot.slane %v1174_v6, 7 }
 0x254   : > { %v1204_v10 = vsel %vm1195_vm7, 0.0, %v1191_v61 }
 0x255   : > { %1638 = vmatmul.msk.bf16.gmra.mxu0 %vm729_vm5, %v1241_v9  ;;  %v1212_v11 = vadd.f32 %v1204_v10, %v1151_v13  ;;  %v1732_v13 = vld [vmem:[%s2165_s18] ss:$0 sm:$0xff] }
 0x257   : > { %v1224_v16 = vadd.f32 %v1731_v24, %v1212_v11 }
 0x259   : > { %v1176_v12 = vpop.permute.xlu1 %1175  ;;  %v1232_v8 = vmax.f32 %v1224_v16, 0.0 }
 0x25a   : > { %v1192_v14 = vrot.slane %v1176_v12, 7 }
 0x25c   : > { %v1205_v15 = vsel %vm1195_vm7, 0.0, %v1192_v14 }
 0x25d   : > { %v1213_v17 = vadd.f32 %v1205_v15, %v1152_v18  ;;  %v1318_v18 = vpop.f32.mrf.mxu1 }
 0x25f   : > { %v1225_v3 = vadd.f32 %v1731_v24, %v1213_v17 }
 0x261   : > { %v1233_v33 = vmax.f32 %v1225_v3, 0.0 }
 0x263   : > { %v1242_v19 = vpack.c.bf16 %v1233_v33, %v1232_v8 }
 0x265   : > { %1639 = vmatmul.msk.bf16.gmra.mxu0 %vm729_vm5, %v1242_v19  ;;  %v1320_v39 = vpop.f32.mrf.mxu1 }
 0x26d   : > { %v1323_v49 = vpop.f32.mrf.mxu1 }
 0x2b2   : > { %v1269_v23 = vpop.f32.mrf.mxu0 }
 0x2b3   : > { %v1314_v25 = vadd.f32 %v1313_v21, %v1269_v23 }
 0x2b5   : > { %v1334_v20 = vadd.f32 %v1314_v25, %v2054_v38 }
 0x2b7   : > { %v1341_v26 = vadd.f32 %v1732_v13, %v1334_v20 }
 0x2b9   : > { %v1345_v24 = vmax.f32 %v1341_v26, 0.0 }
 0x2ba   : > { %v1271_v27 = vpop.f32.mrf.mxu0 }
 0x2bb   : > { %1349 = vst.msk [vmem:[%s1931_s22] sm:$0xff] %vm729_vm5, %v1345_v24  ;;  %v1316_v28 = vadd.f32 %v1315_v22, %v1271_v27 }
 0x2bd   : > { %v1353_v30 = vadd.f32 %v1316_v28, %v2050_v35 }
 0x2bf   : > { %v1357_v31 = vadd.f32 %v1732_v13, %v1353_v30 }
 0x2c1   : > { %v1361_v34 = vmax.f32 %v1357_v31, 0.0 }
 0x2c2   : > { %v1274_v41 = vpop.f32.mrf.mxu0 }
 0x2c3   : > { %1644 = vst.msk [vmem:[%s1931_s22 + $0x8] sm:$0xff] %vm729_vm5, %v1361_v34  ;;  %v1319_v42 = vadd.f32 %v1318_v18, %v1274_v41 }
 0x2c5   : > { %v1335_v38 = vadd.f32 %v1319_v42, %v2056_v40  ;;  %v1325_v40 = vpop.f32.mrf.mxu1 }
 0x2c7   : > { %v1342_v43 = vadd.f32 %v1732_v13, %v1335_v38 }
 0x2c9   : > { %v1346_v45 = vmax.f32 %v1342_v43, 0.0 }
 0x2ca   : > { %v1276_v47 = vpop.f32.mrf.mxu0 }
 0x2cb   : > { %1350 = vst.msk [vmem:[%s1931_s22 + $0x10] sm:$0xff] %vm729_vm5, %v1346_v45  ;;  %v1321_v48 = vadd.f32 %v1320_v39, %v1276_v47 }
 0x2cd   : > { %v1354_v35 = vadd.f32 %v1321_v48, %v2052_v37  ;;  %v1328_v60 = vpop.f32.mrf.mxu1 }
 0x2cf   : > { %v1358_v50 = vadd.f32 %v1732_v13, %v1354_v35 }
 0x2d1   : > { %v1362_v46 = vmax.f32 %v1358_v50, 0.0 }
 0x2d2   : > { %v1279_v52 = vpop.f32.mrf.mxu0 }
 0x2d3   : > { %1645 = vst.msk [vmem:[%s1931_s22 + $0x18] sm:$0xff] %vm729_vm5, %v1362_v46  ;;  %v1324_v53 = vadd.f32 %v1323_v49, %v1279_v52 }
 0x2d5   : > { %v1336_v54 = vadd.f32 %v1324_v53, %v2025_v36  ;;  %v1330_v2 = vpop.f32.mrf.mxu1 }
 0x2d7   : > { %v1343_v55 = vadd.f32 %v1732_v13, %v1336_v54 }
 0x2d9   : > { %v1347_v51 = vmax.f32 %v1343_v55, 0.0 }
 0x2da   : > { %v1281_v57 = vpop.f32.mrf.mxu0 }
 0x2db   : > { %1351 = vst.msk [vmem:[%s1931_s22 + $0x20] sm:$0xff] %vm729_vm5, %v1347_v51  ;;  %v1326_v58 = vadd.f32 %v1325_v40, %v1281_v57 }
 0x2dd   : > { %v1355_v59 = vadd.f32 %v1326_v58, %v1986_v29 }
 0x2df   : > { %v1359_v37 = vadd.f32 %v1732_v13, %v1355_v59 }
 0x2e1   : > { %v1363_v62 = vmax.f32 %v1359_v37, 0.0 }
 0x2e2   : > { %v1284_v63 = vpop.f32.mrf.mxu0 }
 0x2e3   : > { %1646 = vst.msk [vmem:[%s1931_s22 + $0x28] sm:$0xff] %vm729_vm5, %v1363_v62  ;;  %v1329_v0 = vadd.f32 %v1328_v60, %v1284_v63 }
 0x2e5   : > { %v1337_v36 = vadd.f32 %v1329_v0, %v2027_v44 }
 0x2e7   : > { %v1344_v56 = vadd.f32 %v1732_v13, %v1337_v36 }
 0x2e9   : > { %v1348_v1 = vmax.f32 %v1344_v56, 0.0 }
 0x2ea   : > { %v1286_v4 = vpop.f32.mrf.mxu0 }
 0x2eb   : > { %1352 = vst.msk [vmem:[%s1931_s22 + $0x30] sm:$0xff] %vm729_vm5, %v1348_v1  ;;  %v1331_v5 = vadd.f32 %v1330_v2, %v1286_v4 }
 0x2ed   : > { %v1356_v6 = vadd.f32 %v1331_v5, %v1993_v32 }
 0x2ef   : > { %v1360_v29 = vadd.f32 %v1732_v13, %v1356_v6 }
 0x2f1   : > { %v1364_v7 = vmax.f32 %v1360_v29, 0.0 }
 0x2f3   : > { %1647 = vst.msk [vmem:[%s1931_s22 + $0x38] sm:$0xff] %vm729_vm5, %v1364_v7 }
 0x2f4 PF: > { %s2166_s19 = sld [smem:[#allocation7_spill]] }
 0x2f5   : > { %s2167_s21 = sld [smem:[#allocation4_spill]] }
 0x2f6   : > { %s2168_s22 = sld [smem:[#allocation10_spill]] }
 0x2f7   : > { %s2169_s23 = sld [smem:[#allocation5_spill]] }
 0x2f8   : > { %s2170_s24 = sld [smem:[#allocation6_spill]] }
 0x2f9   : > { %s2171_s25 = sld [smem:[#allocation8_spill]] }
 0x2fa   : > { %s22_s27 = sadd.s32 1, %s2166_s19   ;;  %s2172_s26 = sld [smem:[#allocation9_spill]] }
 0x2fb   : > { %p19_p0 = scmp.ge.s32.totalorder %s22_s27, 6  }
 0x2fd   :  { %21 = sbr.rel (!%p19_p0) target bundleno = 8 (0x8), region = 159 }

</bundles_post_ra>
